<compile_context>
chip_gen: v7x
topology: tpu7x:2x2x1
jax: 0.10.0
libtpu: 0.0.40
codegen_flags: <defaults>
</compile_context>

<pallas_src>
import functools
import math

import jax
import jax.numpy as jnp
from jax.experimental import pallas as pl
from jax.experimental.pallas import tpu as pltpu


def _round_up(x, m):
    return (x + m - 1) // m * m


def adapter_kernel(x_ref, wd_ref, bd_ref, wu_ref, bu_ref, o_ref, acc_ref, *, inv_ks):
    # x_ref : (TB, T_KS, H) bf16  contiguous slab of the collapsed (K*S) axis
    # wd_ref: (H, Pp)       bf16  down_proj weight, pre-transposed + lane-padded
    # bd_ref: (1, Pp)       f32   down_proj bias (padded)
    # wu_ref: (Pp, H)       bf16  up_proj weight, pre-transposed + padded
    # bu_ref: (1, H)        f32   up_proj bias
    # o_ref : (TB, H)       f32   output codes (resident across the KS grid axis)
    # acc_ref:(TB, H)       f32   running sum of x over the collapsed (K*S) axis
    s = pl.program_id(1)

    @pl.when(s == 0)
    def _init():
        acc_ref[...] = jnp.zeros_like(acc_ref)

    # Partial sum over this (K*S)-tile; bf16 stream, f32 accumulation.
    acc_ref[...] += jnp.sum(x_ref[...].astype(jnp.float32), axis=1)

    @pl.when(s == pl.num_programs(1) - 1)
    def _finalize():
        # Mean over (K, S) folded in front of the affine down projection (linearity).
        pooled = acc_ref[...] * inv_ks                                   # (TB, H) f32
        wd = wd_ref[...].astype(jnp.float32)
        wu = wu_ref[...].astype(jnp.float32)
        enc = jnp.dot(pooled, wd,
                      preferred_element_type=jnp.float32) + bd_ref[...]  # (TB, Pp)
        codes = jnp.dot(enc, wu,
                        preferred_element_type=jnp.float32) + bu_ref[...]  # (TB, H)
        o_ref[...] = codes.astype(o_ref.dtype)


def base_sample_adapter_forward(x, wd, bd, wu, bu, *, tb_max=128, per_buffer_cap=16 << 20):
    """x: [B, K, S, H] -> codes: [B, H].

    wd: (P, H) / bd: (1, P) / wu: (H, P) / bu: (1, H)  (PyTorch nn.Linear [out, in] layout).
    """
    B, K, S, H = x.shape
    P = wd.shape[0]
    KS = K * S

    # ---- one-time wrapper-side layout plumbing (grid-invariant) ----
    # Pre-transpose weights (no in-kernel XLU transpose), pad the projection dim to a
    # 128-lane multiple (lane-dense intermediates), and store them in bf16.
    Pp = max(_round_up(P, 128), 128)
    wd_t = jnp.zeros((H, Pp), jnp.bfloat16).at[:, :P].set(wd.T.astype(jnp.bfloat16))
    wu_t = jnp.zeros((Pp, H), jnp.bfloat16).at[:P, :].set(wu.T.astype(jnp.bfloat16))
    bd_p = jnp.zeros((1, Pp), jnp.float32).at[:, :P].set(bd.reshape(1, P).astype(jnp.float32))
    bu_p = bu.reshape(1, H).astype(jnp.float32)

    # Collapse K and S (contiguous DMA slabs) and stream x in bf16.
    xs = x.reshape(B, KS, H).astype(jnp.bfloat16)

    # ---- generation-aware tile / VMEM budgeting ----
    try:
        vmem_cap = int(pltpu.get_tpu_info().vmem_capacity_bytes)
    except Exception:
        vmem_cap = 64 << 20  # conservative fallback (v7x physical capacity)
    target = max(24 << 20, min(int(0.70 * vmem_cap), 100 << 20))

    # Batch tile: large (M=tb matmuls, fewer grid steps), but keep >= 2 batch tiles
    # when B allows so the "parallel" axis can shard across both v7x TensorCores.
    Bp8 = _round_up(B, 8)
    tb = min(tb_max, Bp8)
    if Bp8 // tb < 2 and Bp8 >= 16:
        tb = _round_up(Bp8 // 2, 8)
    Bp = _round_up(B, tb)

    itemsize = xs.dtype.itemsize
    w_bytes = 2 * ((H * Pp + Pp * H) * wd_t.dtype.itemsize + (Pp + H) * 4)
    misc_bytes = 3 * tb * H * 4 + (2 << 20)  # acc scratch + double-buffered output + slack
    x_budget = max(target - w_bytes - misc_bytes, 2 * 8 * tb * H * itemsize)
    per_buf = min(x_budget // 2, per_buffer_cap)
    KSp8 = _round_up(KS, 8)
    t_ks = max(8, min((per_buf // (tb * H * itemsize)) // 8 * 8, KSp8))
    KSp = _round_up(KS, t_ks)

    if (Bp, KSp) != (B, KS):
        # Zero padding contributes 0 to the accumulated sum; we divide by the true
        # K*S and slice padded batch rows off, so the result is unchanged.
        xs = jnp.pad(xs, ((0, Bp - B), (0, KSp - KS), (0, 0)))

    x_tile_bytes = tb * t_ks * H * itemsize
    need = 2 * x_tile_bytes + w_bytes + misc_bytes
    vmem_limit = int(max(min(max(need, 32 << 20), vmem_cap), need))  # never below need

    inv_ks = 1.0 / float(K * S)
    kernel = functools.partial(adapter_kernel, inv_ks=inv_ks)

    out = pl.pallas_call(
        kernel,
        out_shape=jax.ShapeDtypeStruct((Bp, H), jnp.float32),
        grid_spec=pltpu.PrefetchScalarGridSpec(
            num_scalar_prefetch=0,
            grid=(Bp // tb, KSp // t_ks),
            in_specs=[
                pl.BlockSpec((tb, t_ks, H), lambda b, s: (b, s, 0)),
                pl.BlockSpec((H, Pp), lambda b, s: (0, 0)),
                pl.BlockSpec((1, Pp), lambda b, s: (0, 0)),
                pl.BlockSpec((Pp, H), lambda b, s: (0, 0)),
                pl.BlockSpec((1, H), lambda b, s: (0, 0)),
            ],
            out_specs=pl.BlockSpec((tb, H), lambda b, s: (b, 0)),
            scratch_shapes=[pltpu.VMEM((tb, H), jnp.float32)],
        ),
        compiler_params=pltpu.CompilerParams(
            dimension_semantics=("parallel", "arbitrary"),
            vmem_limit_bytes=vmem_limit,
        ),
    )(xs, wd_t, bd_p, wu_t, bu_p)
    return out[:B]


def _linear_init(key, out_features, in_features):
    """Deterministic PyTorch-nn.Linear-style init: U(-1/sqrt(fan_in), +1/sqrt(fan_in))."""
    kw, kb = jax.random.split(key)
    bound = 1.0 / math.sqrt(in_features)
    w = jax.random.uniform(kw, (out_features, in_features),
                           minval=-bound, maxval=bound, dtype=jnp.float32)
    b = jax.random.uniform(kb, (1, out_features),
                           minval=-bound, maxval=bound, dtype=jnp.float32)
    return w, b


def reference_forward(x, wd, bd, wu, bu):
    pooled = jnp.mean(x, axis=2)                        # (B, K, H)  mean over seq
    enc = pooled @ wd.T + bd                            # (B, K, P)  down_proj
    agg = jnp.mean(enc, axis=1)                         # (B, P)     aggregate over K
    return agg @ wu.T + bu                              # (B, H)     up_proj


if __name__ == "__main__":
    # Small shapes: batch=2, num_samples=4, seq_len=16, hidden=32, projection=16.
    B, K, S, H, P = 2, 4, 16, 32, 16

    key = jax.random.PRNGKey(0)
    kx, kd, ku = jax.random.split(key, 3)

    x = jax.random.normal(kx, (B, K, S, H), dtype=jnp.float32)
    wd, bd = _linear_init(kd, P, H)   # down_proj: hidden -> projection
    wu, bu = _linear_init(ku, H, P)   # up_proj:   projection -> hidden

    codes = base_sample_adapter_forward(x, wd, bd, wu, bu)
    jax.block_until_ready(codes)
    assert codes.shape == (B, H)

    # bf16-streaming-aware reference (same quantization of x / weights, f32 math).
    xq = x.astype(jnp.bfloat16).astype(jnp.float32)
    wdq = wd.astype(jnp.bfloat16).astype(jnp.float32)
    wuq = wu.astype(jnp.bfloat16).astype(jnp.float32)
    ref_q = reference_forward(xq, wdq, bd, wuq, bu)
    assert jnp.allclose(codes, ref_q, atol=1e-4, rtol=1e-4)

    # Full-f32 reference: semantics preserved up to bf16 streaming error.
    ref = reference_forward(x, wd, bd, wu, bu)
    assert jnp.allclose(codes, ref, atol=3e-2, rtol=3e-2)

    # TODO(synk): process_samples/aggregator are abstract in the PyTorch base class;
    # mean-pool over seq + mean over K chosen as the concrete instantiation.
    print("KERNEL_OK")
</pallas_src>

<mosaic_0001>
module attributes {stable_mosaic.version = 11 : i64} {
  func.func @adapter_kernel(%arg0: i32, %arg1: i32, %arg2: memref<8x64x32xbf16, #tpu.memory_space<vmem>>, %arg3: memref<32x128xbf16, #tpu.memory_space<vmem>>, %arg4: memref<1x128xf32, #tpu.memory_space<vmem>>, %arg5: memref<128x32xbf16, #tpu.memory_space<vmem>>, %arg6: memref<1x32xf32, #tpu.memory_space<vmem>>, %arg7: memref<8x32xf32, #tpu.memory_space<vmem>>, %arg8: memref<8x32xf32, #tpu.memory_space<vmem>>) attributes {dimension_semantics = [#tpu.dimension_semantics<parallel>, #tpu.dimension_semantics<arbitrary>], iteration_bounds = array<i64: 1, 1>, scalar_prefetch = 0 : i64, scratch_operands = 1 : i64, tpu.core_type = #tpu.core_type<tc>, window_params = [{transform_indices = @transform_0, window_bounds = array<i64: 8, 64, 32>}, {pipeline_mode = #tpu.pipeline_mode<synchronous>, transform_indices = @transform_1, window_bounds = array<i64: 32, 128>}, {pipeline_mode = #tpu.pipeline_mode<synchronous>, transform_indices = @transform_2, window_bounds = array<i64: 1, 128>}, {pipeline_mode = #tpu.pipeline_mode<synchronous>, transform_indices = @transform_3, window_bounds = array<i64: 128, 32>}, {pipeline_mode = #tpu.pipeline_mode<synchronous>, transform_indices = @transform_4, window_bounds = array<i64: 1, 32>}, {transform_indices = @transform_5, window_bounds = array<i64: 8, 32>}]} {
    %c0_i32 = arith.constant 0 : i32
    %0 = arith.cmpi eq, %arg1, %c0_i32 : i32
    %1 = arith.extui %0 : i1 to i32
    %c0_i32_0 = arith.constant 0 : i32
    %2 = arith.cmpi ne, %1, %c0_i32_0 : i32
    scf.if %2 {
      %cst_9 = arith.constant 0.000000e+00 : f32
      %12 = vector.broadcast %cst_9 : f32 to vector<8x32xf32>
      %c0_10 = arith.constant 0 : index
      %c0_11 = arith.constant 0 : index
      %13 = vector.load %arg8[%c0_10, %c0_11] : memref<8x32xf32, #tpu.memory_space<vmem>>, vector<8x32xf32>
      tpu.vector_store %arg8[%c0_10, %c0_11], %12 {strides = array<i32>} : memref<8x32xf32, #tpu.memory_space<vmem>>, vector<8x32xf32>,
    } else {
    }
    %c0 = arith.constant 0 : index
    %c0_1 = arith.constant 0 : index
    %3 = vector.load %arg8[%c0, %c0_1] : memref<8x32xf32, #tpu.memory_space<vmem>>, vector<8x32xf32>
    %c0_2 = arith.constant 0 : index
    %c0_3 = arith.constant 0 : index
    %c0_4 = arith.constant 0 : index
    %4 = vector.load %arg2[%c0_2, %c0_3, %c0_4] : memref<8x64x32xbf16, #tpu.memory_space<vmem>>, vector<8x64x32xbf16>
    %5 = arith.extf %4 : vector<8x64x32xbf16> to vector<8x64x32xf32>
    %cst = arith.constant dense<0.000000e+00> : vector<8x32xf32>
    %6 = vector.multi_reduction <add>, %5, %cst [1] : vector<8x64x32xf32> to vector<8x32xf32>
    %7 = arith.addf %3, %6 : vector<8x32xf32>
    %c0_5 = arith.constant 0 : index
    %c0_6 = arith.constant 0 : index
    %8 = vector.load %arg8[%c0_5, %c0_6] : memref<8x32xf32, #tpu.memory_space<vmem>>, vector<8x32xf32>
    tpu.vector_store %arg8[%c0_5, %c0_6], %7 {strides = array<i32>} : memref<8x32xf32, #tpu.memory_space<vmem>>, vector<8x32xf32>,
    %c0_i32_7 = arith.constant 0 : i32
    %9 = arith.cmpi eq, %arg1, %c0_i32_7 : i32
    %10 = arith.extui %9 : i1 to i32
    %c0_i32_8 = arith.constant 0 : i32
    %11 = arith.cmpi ne, %10, %c0_i32_8 : i32
    scf.if %11 {
      %c0_9 = arith.constant 0 : index
      %c0_10 = arith.constant 0 : index
      %12 = vector.load %arg8[%c0_9, %c0_10] : memref<8x32xf32, #tpu.memory_space<vmem>>, vector<8x32xf32>
      %cst_11 = arith.constant 1.562500e-02 : f32
      %13 = vector.broadcast %cst_11 : f32 to vector<8x32xf32>
      %14 = arith.mulf %12, %13 : vector<8x32xf32>
      %c0_12 = arith.constant 0 : index
      %c0_13 = arith.constant 0 : index
      %15 = vector.load %arg3[%c0_12, %c0_13] : memref<32x128xbf16, #tpu.memory_space<vmem>>, vector<32x128xbf16>
      %16 = arith.extf %15 : vector<32x128xbf16> to vector<32x128xf32>
      %c0_14 = arith.constant 0 : index
      %c0_15 = arith.constant 0 : index
      %17 = vector.load %arg5[%c0_14, %c0_15] : memref<128x32xbf16, #tpu.memory_space<vmem>>, vector<128x32xbf16>
      %18 = arith.extf %17 : vector<128x32xbf16> to vector<128x32xf32>
      %cst_16 = arith.constant dense<0.000000e+00> : vector<8x128xf32>
      %19 = tpu.matmul %14, %16, %cst_16 {dimension_numbers = #tpu.dot_dimension_numbers<[1], [0], [0], [1], [0, 0, 1, 1], [], []>} : vector<8x32xf32>, vector<32x128xf32>, vector<8x128xf32> -> vector<8x128xf32>
      %c0_17 = arith.constant 0 : index
      %c0_18 = arith.constant 0 : index
      %20 = vector.load %arg4[%c0_17, %c0_18] : memref<1x128xf32, #tpu.memory_space<vmem>>, vector<1x128xf32>
      %21 = vector.broadcast %20 : vector<1x128xf32> to vector<8x128xf32>
      %22 = arith.addf %19, %21 : vector<8x128xf32>
      %cst_19 = arith.constant dense<0.000000e+00> : vector<8x32xf32>
      %23 = tpu.matmul %22, %18, %cst_19 {dimension_numbers = #tpu.dot_dimension_numbers<[1], [0], [0], [1], [0, 0, 1, 1], [], []>} : vector<8x128xf32>, vector<128x32xf32>, vector<8x32xf32> -> vector<8x32xf32>
      %c0_20 = arith.constant 0 : index
      %c0_21 = arith.constant 0 : index
      %24 = vector.load %arg6[%c0_20, %c0_21] : memref<1x32xf32, #tpu.memory_space<vmem>>, vector<1x32xf32>
      %25 = vector.broadcast %24 : vector<1x32xf32> to vector<8x32xf32>
      %26 = arith.addf %23, %25 : vector<8x32xf32>
      %c0_22 = arith.constant 0 : index
      %c0_23 = arith.constant 0 : index
      %27 = vector.load %arg7[%c0_22, %c0_23] : memref<8x32xf32, #tpu.memory_space<vmem>>, vector<8x32xf32>
      tpu.vector_store %arg7[%c0_22, %c0_23], %26 {strides = array<i32>} : memref<8x32xf32, #tpu.memory_space<vmem>>, vector<8x32xf32>,
    } else {
    }
    return
  }
  func.func @transform_0(%arg0: i32, %arg1: i32) -> (i32, i32, i32) {
    %c0_i32 = arith.constant 0 : i32
    %c0_i32_0 = arith.constant 0 : i32
    return %arg0, %arg1, %c0_i32 : i32, i32, i32
  }
  func.func @transform_1(%arg0: i32, %arg1: i32) -> (i32, i32) {
    %c0_i32 = arith.constant 0 : i32
    %c0_i32_0 = arith.constant 0 : i32
    %c0_i32_1 = arith.constant 0 : i32
    return %c0_i32, %c0_i32_0 : i32, i32
  }
  func.func @transform_2(%arg0: i32, %arg1: i32) -> (i32, i32) {
    %c0_i32 = arith.constant 0 : i32
    %c0_i32_0 = arith.constant 0 : i32
    %c0_i32_1 = arith.constant 0 : i32
    return %c0_i32, %c0_i32_0 : i32, i32
  }
  func.func @transform_3(%arg0: i32, %arg1: i32) -> (i32, i32) {
    %c0_i32 = arith.constant 0 : i32
    %c0_i32_0 = arith.constant 0 : i32
    %c0_i32_1 = arith.constant 0 : i32
    return %c0_i32, %c0_i32_0 : i32, i32
  }
  func.func @transform_4(%arg0: i32, %arg1: i32) -> (i32, i32) {
    %c0_i32 = arith.constant 0 : i32
    %c0_i32_0 = arith.constant 0 : i32
    %c0_i32_1 = arith.constant 0 : i32
    return %c0_i32, %c0_i32_0 : i32, i32
  }
  func.func @transform_5(%arg0: i32, %arg1: i32) -> (i32, i32) {
    %c0_i32 = arith.constant 0 : i32
    %c0_i32_0 = arith.constant 0 : i32
    return %arg0, %c0_i32 : i32, i32
  }
}

</mosaic_0001>

<bundles_post_ra>
// kernel: tpu_custom_call.1
= control target key start
LH: loop header
LB: loop body
LE: loop exit
PB: predicated region body
PF: predicated region fallthrough
CT: control target
= control target key end

     0   :  { %vm25_vm0 = vcmask 261120   ;;  %v903_v1 = vmov 0.0|0.0   ;;  %v1400_v2 = vmov 0.0   ;;  %s1394_s0 = inlined_call_operand.vmem [shape: bf16[8,64,32], index: 0, kind: input, shape index: {}]   ;;  %s1395_s1 = inlined_call_operand.vmem [shape: bf16[32,128], index: 1, kind: input, shape index: {}]   ;;  %s1396_s2 = inlined_call_operand.vmem [shape: f32[1,128], index: 2, kind: input, shape index: {}]   ;;  %s1397_s3 = inlined_call_operand.vmem [shape: bf16[128,32], index: 3, kind: input, shape index: {}]   ;;  %s1398_s4 = inlined_call_operand.vmem [shape: f32[1,32], index: 4, kind: input, shape index: {}]   ;;  %s1399_s5 = inlined_call_operand.hbm [shape: f32[8,32], index: 5, kind: output, shape index: {}]  }
   0x1   :  { %v699_v0 = vld [vmem:[%s1395_s1] sm:$0xff]   ;;  %845 = vmatprep.subr.bf16.mxu0 %v903_v1  ;;  %26 = vst.msk [vmem:[#allocation2] sm:$0xff] %vm25_vm0, %v1400_v2  ;;  %851 = vmatprep.subr.bf16.mxu1 %v903_v1  ;;  %v952_v4 = vld [vmem:[%s1394_s0 + $0x8] sm:$0xff]   ;;  %v957_v5 = vld [vmem:[%s1394_s0 + $0x10] sm:$0xff]  }
   0x2   :  { %v946_v3 = vld [vmem:[%s1394_s0] sm:$0xff]   ;;  %847 = vmatpush3.bf16.msra.mxu0 %v699_v0  ;;  %v769_v6 = vld [vmem:[%s1395_s1 + $0x8] sm:$0xff]   ;;  %v966_v7 = vld [vmem:[%s1394_s0 + $0x18] sm:$0xff]   ;;  %v576_v13 = vunpack.c.l.bf16 %v952_v4  ;;  %v577_v14 = vunpack.c.h.bf16 %v952_v4  ;;  %v580_v15 = vunpack.c.l.bf16 %v957_v5  ;;  %v581_v16 = vunpack.c.h.bf16 %v957_v5 }
   0x3   :  { %848 = vmatprep.subr.bf16.mxu0 %v903_v1  ;;  %v971_v8 = vld [vmem:[%s1394_s0 + $0x20] sm:$0xff]   ;;  %v572_v9 = vunpack.c.l.bf16 %v946_v3  ;;  %v573_v10 = vunpack.c.h.bf16 %v946_v3  ;;  %v978_v11 = vld [vmem:[%s1394_s0 + $0x28] sm:$0xff]   ;;  %v983_v12 = vld [vmem:[%s1394_s0 + $0x30] sm:$0xff]   ;;  %v584_v19 = vunpack.c.l.bf16 %v966_v7  ;;  %v585_v20 = vunpack.c.h.bf16 %v966_v7 }
   0x4   :  { %v992_v17 = vld [vmem:[%s1394_s0 + $0x38] sm:$0xff]   ;;  %v997_v18 = vld [vmem:[%s1394_s0 + $0x40] sm:$0xff]   ;;  %v588_v21 = vunpack.c.l.bf16 %v971_v8  ;;  %v589_v22 = vunpack.c.h.bf16 %v971_v8  ;;  %v1006_v23 = vld [vmem:[%s1394_s0 + $0x48] sm:$0xff]   ;;  %v592_v25 = vunpack.c.l.bf16 %v978_v11  ;;  %v593_v26 = vunpack.c.h.bf16 %v978_v11 }
   0x5   :  { %v1011_v24 = vld [vmem:[%s1394_s0 + $0x50] sm:$0xff]   ;;  %v596_v27 = vunpack.c.l.bf16 %v983_v12  ;;  %v597_v28 = vunpack.c.h.bf16 %v983_v12  ;;  %v1020_v29 = vld [vmem:[%s1394_s0 + $0x58] sm:$0xff]   ;;  %v1025_v30 = vld [vmem:[%s1394_s0 + $0x60] sm:$0xff]   ;;  %v600_v31 = vunpack.c.l.bf16 %v992_v17  ;;  %v601_v32 = vunpack.c.h.bf16 %v992_v17 }
   0x6   :  { %850 = vmatpush3.bf16.msra.mxu0 %v769_v6  ;;  %v604_v33 = vunpack.c.l.bf16 %v997_v18  ;;  %v605_v34 = vunpack.c.h.bf16 %v997_v18  ;;  %v1034_v35 = vld [vmem:[%s1394_s0 + $0x68] sm:$0xff]   ;;  %v1039_v36 = vld [vmem:[%s1394_s0 + $0x70] sm:$0xff]   ;;  %v608_v37 = vunpack.c.l.bf16 %v1006_v23  ;;  %v609_v38 = vunpack.c.h.bf16 %v1006_v23  ;;  %v1048_v41 = vld [vmem:[%s1394_s0 + $0x78] sm:$0xff]  }
   0x7   :  { %v612_v39 = vunpack.c.l.bf16 %v1011_v24  ;;  %v613_v40 = vunpack.c.h.bf16 %v1011_v24  ;;  %v1053_v42 = vld [vmem:[%s1394_s0 + $0x80] sm:$0xff]   ;;  %v616_v43 = vunpack.c.l.bf16 %v1020_v29  ;;  %v617_v44 = vunpack.c.h.bf16 %v1020_v29  ;;  %v1062_v47 = vld [vmem:[%s1394_s0 + $0x88] sm:$0xff]   ;;  %v1067_v48 = vld [vmem:[%s1394_s0 + $0x90] sm:$0xff]  }
   0x8   :  { %v620_v45 = vunpack.c.l.bf16 %v1025_v30  ;;  %v621_v46 = vunpack.c.h.bf16 %v1025_v30  ;;  %v624_v49 = vunpack.c.l.bf16 %v1034_v35  ;;  %v1076_v53 = vld [vmem:[%s1394_s0 + $0x98] sm:$0xff]   ;;  %v1081_v54 = vld [vmem:[%s1394_s0 + $0xa0] sm:$0xff]   ;;  %v1093_v60 = vld [vmem:[%s1394_s0 + $0xa8] sm:$0xff]  }
   0x9   :  { %v707_v55 = vld [vmem:[%s1397_s3] sm:$0xff]   ;;  %v1098_v61 = vld [vmem:[%s1394_s0 + $0xb0] sm:$0xff]   ;;  %v1107_v2 = vld [vmem:[%s1394_s0 + $0xb8] sm:$0xff]  }
   0xa   :  { %853 = vmatpush3.bf16.msra.mxu1 %v707_v55  ;;  %v1112_v57 = vld [vmem:[%s1394_s0 + $0xc0] sm:$0xff]   ;;  %v770_v55 = vld [vmem:[%s1397_s3 + $0x8] sm:$0xff]  }
   0xb   :  { %854 = vmatprep.subr.bf16.mxu1 %v903_v1  ;;  %v1125_v52 = vld [vmem:[%s1394_s0 + $0xc8] sm:$0xff]  }
   0xc   :  { %10 = vsyncpa [#allocation4], 0  ;;  %v1134_v6 = vld [vmem:[%s1394_s0 + $0xd0] sm:$0xff]   ;;  %v1143_v59 = vld [vmem:[%s1394_s0 + $0xd8] sm:$0xff]   ;;  %v157_v56 = vsel %vm25_vm0, %v572_v9, 0.0  ;;  %v158_v63 = vsel %vm25_vm0, %v573_v10, 0.0 }
   0xd   :  { %v771_v50 = vld [vmem:[%s1397_s3 + $0x10] sm:$0xff]   ;;  %v677_v0 = vunpack.c.h.bf16 %v1134_v6  ;;  %v159_v58 = vadd.f32 %v158_v63, %v157_v56  ;;  %v160_v51 = vsel %vm25_vm0, %v576_v13, 0.0  ;;  %v680_v9 = vunpack.c.l.bf16 %v1143_v59  ;;  %v774_v29 = vld [vmem:[%s1397_s3 + $0x28] sm:$0xff]   ;;  %s906_s27 = smov [#allocation3]  }
   0xe   :  { %856 = vmatpush3.bf16.msra.mxu1 %v770_v55  ;;  %v681_v3 = vunpack.c.h.bf16 %v1143_v59  ;;  %v162_v10 = vsel %vm25_vm0, %v577_v14, 0.0  ;;  %v178_v62 = vsel %vm25_vm0, %v588_v21, 0.0  ;;  %v164_v56 = vsel %vm25_vm0, %v580_v15, 0.0  ;;  %v772_v21 = vld [vmem:[%s1397_s3 + $0x18] sm:$0xff]   ;;  %s559_s28 = sshll.u32 %s906_s27, 4  ;;  %s560_s28 = int_to_ptr.vmem [resolvable:$true] %s559_s28 }
   0xf   :  { %857 = vmatprep.subr.bf16.mxu1 %v903_v1  ;;  %v161_v55 = vadd.f32 %v160_v51, %v159_v58  ;;  %v179_v13 = vsel %vm25_vm0, %v589_v22, 0.0  ;;  %v181_v63 = vsel %vm25_vm0, %v592_v25, 0.0  ;;  %v166_v4 = vsel %vm25_vm0, %v581_v16, 0.0  ;;  %p884_p1 = scmp.lt.s32.totalorder %s560_s28, %s560_s28 }
  0x10   :  { %v168_v14 = vsel %vm25_vm0, %v584_v19, 0.0  ;;  %v170_v15 = vsel %vm25_vm0, %v585_v20, 0.0  ;;  %v180_v8 = vadd.f32 %v179_v13, %v178_v62  ;;  %v183_v5 = vsel %vm25_vm0, %v593_v26, 0.0 }
  0x11   :  { %v163_v22 = vadd.f32 %v162_v10, %v161_v55  ;;  %v199_v16 = vsel %vm25_vm0, %v604_v33, 0.0  ;;  %v200_v7 = vsel %vm25_vm0, %v605_v34, 0.0  ;;  %v185_v20 = vsel %vm25_vm0, %v596_v27, 0.0 }
  0x12   :  { %859 = vmatpush3.bf16.msra.mxu1 %v771_v50  ;;  %v182_v19 = vadd.f32 %v181_v63, %v180_v8  ;;  %v201_v25 = vadd.f32 %v200_v7, %v199_v16  ;;  %v202_v11 = vsel %vm25_vm0, %v608_v37, 0.0  ;;  %v187_v26 = vsel %vm25_vm0, %v597_v28, 0.0  ;;  %v773_v28 = vld [vmem:[%s1397_s3 + $0x20] sm:$0xff]  }
  0x13   :  { %860 = vmatprep.subr.bf16.mxu1 %v903_v1  ;;  %v165_v50 = vadd.f32 %v164_v56, %v163_v22  ;;  %v189_v18 = vsel %vm25_vm0, %v600_v31, 0.0  ;;  %v204_v33 = vsel %vm25_vm0, %v609_v38, 0.0  ;;  %v191_v34 = vsel %vm25_vm0, %v601_v32, 0.0 }
  0x14   :  { %v184_v27 = vadd.f32 %v183_v5, %v182_v19  ;;  %v203_v37 = vadd.f32 %v202_v11, %v201_v25  ;;  %v220_v12 = vsel %vm25_vm0, %v620_v45, 0.0  ;;  %v206_v31 = vsel %vm25_vm0, %v612_v39, 0.0 }
  0x15   :  { %v167_v23 = vadd.f32 %v166_v4, %v165_v50  ;;  %v221_v17 = vsel %vm25_vm0, %v621_v46, 0.0  ;;  %v223_v32 = vsel %vm25_vm0, %v624_v49, 0.0  ;;  %v208_v51 = vsel %vm25_vm0, %v613_v40, 0.0 }
  0x16   :  { %862 = vmatpush3.bf16.msra.mxu1 %v772_v21  ;;  %v186_v38 = vadd.f32 %v185_v20, %v184_v27  ;;  %v205_v45 = vadd.f32 %v204_v33, %v203_v37  ;;  %v222_v58 = vadd.f32 %v221_v17, %v220_v12  ;;  %v210_v39 = vsel %vm25_vm0, %v616_v43, 0.0 }
  0x17   :  { %863 = vmatprep.subr.bf16.mxu1 %v903_v1  ;;  %v169_v62 = vadd.f32 %v168_v14, %v167_v23  ;;  %v212_v30 = vsel %vm25_vm0, %v617_v44, 0.0  ;;  %v1402_v46 = vunpack.c.h.bf16 %v1034_v35  ;;  %v1403_v40 = vunpack.c.l.bf16 %v1053_v42  ;;  %v1288_v23 = vld [vmem:[%s1394_s0 + $0xe0] sm:$0xff]  }
  0x18   :  { %v188_v55 = vadd.f32 %v187_v26, %v186_v38  ;;  %v207_v10 = vadd.f32 %v206_v31, %v205_v45  ;;  %v224_v24 = vadd.f32 %v223_v32, %v222_v58  ;;  %v1404_v44 = vunpack.c.l.bf16 %v1039_v36 }
  0x19   :  { %v225_v49 = vsel %vm25_vm0, %v1402_v46, 0.0  ;;  %v241_v56 = vsel %vm25_vm0, %v1403_v40, 0.0  ;;  %v171_v43 = vadd.f32 %v170_v15, %v169_v62  ;;  %v1405_v13 = vunpack.c.h.bf16 %v1053_v42 }
  0x1a   :  { %865 = vmatpush3.bf16.msra.mxu1 %v773_v28  ;;  %v227_v35 = vsel %vm25_vm0, %v1404_v44, 0.0  ;;  %v1406_v4 = vunpack.c.l.bf16 %v1062_v47  ;;  %v190_v8 = vadd.f32 %v189_v18, %v188_v55  ;;  %v209_v21 = vadd.f32 %v208_v51, %v207_v10 }
  0x1b   :  { %866 = vmatprep.subr.bf16.mxu1 %v903_v1  ;;  %v242_v63 = vsel %vm25_vm0, %v1405_v13, 0.0  ;;  %v226_v22 = vadd.f32 %v225_v49, %v224_v24  ;;  %v172_v16 = vrot.slane %v171_v43, 4  ;;  %v1407_v7 = vunpack.c.h.bf16 %v1039_v36  ;;  %v775_v36 = vld [vmem:[%s1397_s3 + $0x30] sm:$0xff]  }
  0x1c   :  { %v244_v14 = vsel %vm25_vm0, %v1406_v4, 0.0  ;;  %v243_v5 = vadd.f32 %v242_v63, %v241_v56  ;;  %v1408_v19 = vunpack.c.l.bf16 %v1048_v41  ;;  %v1409_v42 = vunpack.c.h.bf16 %v1062_v47 }
  0x1d   :  { %v229_v15 = vsel %vm25_vm0, %v1407_v7, 0.0  ;;  %v192_v11 = vadd.f32 %v191_v34, %v190_v8  ;;  %v211_v50 = vadd.f32 %v210_v39, %v209_v21  ;;  %v228_v26 = vadd.f32 %v227_v35, %v226_v22 }
  0x1e   :  { %v231_v20 = vsel %vm25_vm0, %v1408_v19, 0.0  ;;  %v246_v25 = vsel %vm25_vm0, %v1409_v42, 0.0  ;;  %868 = vmatpush3.bf16.msra.mxu1 %v774_v29  ;;  %v245_v18 = vadd.f32 %v244_v14, %v243_v5  ;;  %v173_v33 = vadd.f32 %v172_v16, %v171_v43 }
  0x1f   :  { %869 = vmatprep.subr.bf16.mxu1 %v903_v1  ;;  %v1410_v27 = vunpack.c.l.bf16 %v1067_v48  ;;  %v1411_v47 = vunpack.c.l.bf16 %v1081_v54  ;;  %v1412_v34 = vunpack.c.h.bf16 %v1081_v54  ;;  %v193_v31 = vrot.slane %v192_v11, 4 }
  0x20   :  { %v213_v17 = vadd.f32 %v212_v30, %v211_v50  ;;  %v230_v32 = vadd.f32 %v229_v15, %v228_v26  ;;  %v247_v38 = vadd.f32 %v246_v25, %v245_v18  ;;  %v1413_v45 = vunpack.c.h.bf16 %v1048_v41  ;;  %v1302_v30 = vld [vmem:[%s1394_s0 + $0xe8] sm:$0xff]   ;;  %v767_v26 = vld [vmem:[%s1394_s0 + $0xf0] sm:$0xff]  }
  0x21   :  { %v248_v37 = vsel %vm25_vm0, %v1410_v27, 0.0  ;;  %v262_v12 = vsel %vm25_vm0, %v1411_v47, 0.0  ;;  %v263_v28 = vsel %vm25_vm0, %v1412_v34, 0.0  ;;  %v1414_v58 = vunpack.c.h.bf16 %v1067_v48 }
  0x22   :  { %v233_v51 = vsel %vm25_vm0, %v1413_v45, 0.0  ;;  %v264_v54 = vadd.f32 %v263_v28, %v262_v12  ;;  %v1415_v39 = vunpack.c.l.bf16 %v1093_v60  ;;  %871 = vmatpush3.bf16.msra.mxu1 %v775_v36  ;;  %v214_v49 = vrot.slane %v213_v17, 4 }
  0x23   :  { %v250_v62 = vsel %vm25_vm0, %v1414_v58, 0.0  ;;  %v232_v55 = vadd.f32 %v231_v20, %v230_v32  ;;  %v249_v41 = vadd.f32 %v248_v37, %v247_v38  ;;  %v1416_v10 = vunpack.c.h.bf16 %v1093_v60  ;;  %872 = vmatprep.subr.bf16.mxu1 %v903_v1 }
  0x24   :  { %v265_v46 = vsel %vm25_vm0, %v1415_v39, 0.0  ;;  %v684_v24 = vunpack.c.l.bf16 %v1288_v23  ;;  %v194_v40 = vadd.f32 %v193_v31, %v192_v11  ;;  %v1417_v56 = vunpack.c.l.bf16 %v1076_v53 }
  0x25   :  { %v267_v48 = vsel %vm25_vm0, %v1416_v10, 0.0  ;;  %v266_v43 = vadd.f32 %v265_v46, %v264_v54  ;;  %v174_v44 = vrot.slane %v173_v33, 2  ;;  %v234_v35 = vadd.f32 %v233_v51, %v232_v55 }
  0x26   :  { %v252_v29 = vsel %vm25_vm0, %v1417_v56, 0.0  ;;  %v251_v13 = vadd.f32 %v250_v62, %v249_v41  ;;  %v1418_v63 = vunpack.c.l.bf16 %v1098_v61  ;;  %v685_v60 = vunpack.c.h.bf16 %v1288_v23 }
  0x27   :  { %v688_v14 = vunpack.c.l.bf16 %v1302_v30  ;;  %v1419_v1 = vunpack.c.h.bf16 %v1076_v53  ;;  %v268_v21 = vadd.f32 %v267_v48, %v266_v43  ;;  %v215_v22 = vadd.f32 %v214_v49, %v213_v17 }
  0x28   :  { %v269_v4 = vsel %vm25_vm0, %v1418_v63, 0.0  ;;  %v235_v5 = vrot.slane %v234_v35, 4  ;;  %v253_v16 = vadd.f32 %v252_v29, %v251_v13  ;;  %v1420_v7 = vunpack.c.h.bf16 %v1098_v61 }
  0x29   :  { %v254_v8 = vsel %vm25_vm0, %v1419_v1, 0.0  ;;  %v195_v19 = vrot.slane %v194_v40, 2  ;;  %v270_v20 = vadd.f32 %v269_v4, %v268_v21  ;;  %v1421_v42 = vunpack.c.l.bf16 %v1112_v57 }
  0x2a   :  { %v271_v15 = vsel %vm25_vm0, %v1420_v7, 0.0  ;;  %v1422_v11 = vunpack.c.h.bf16 %v1112_v57  ;;  %v689_v50 = vunpack.c.h.bf16 %v1302_v30  ;;  %v175_v18 = vadd.f32 %v174_v44, %v173_v33 }
  0x2b   :  { %v283_v25 = vsel %vm25_vm0, %v1421_v42, 0.0  ;;  %v255_v61 = vadd.f32 %v254_v8, %v253_v16  ;;  %v1423_v36 = vunpack.c.l.bf16 %v1107_v2  ;;  %v236_v37 = vadd.f32 %v235_v5, %v234_v35 }
  0x2c   :  { %v284_v53 = vsel %vm25_vm0, %v1422_v11, 0.0  ;;  %v272_v47 = vadd.f32 %v271_v15, %v270_v20  ;;  %v1424_v34 = vunpack.c.l.bf16 %v1125_v52  ;;  %v216_v28 = vrot.slane %v215_v22, 2 }
  0x2d   :  { %v273_v27 = vsel %vm25_vm0, %v1423_v36, 0.0  ;;  %v285_v12 = vadd.f32 %v284_v53, %v283_v25  ;;  %v256_v23 = vrot.slane %v255_v61, 4  ;;  %v1425_v31 = vunpack.c.h.bf16 %v1107_v2  ;;  %v768_v2 = vld [vmem:[%s1394_s0 + $0xf8] sm:$0xff]  }
  0x2e   :  { %v286_v57 = vsel %vm25_vm0, %v1424_v34, 0.0  ;;  %v1426_v33 = vunpack.c.h.bf16 %v1125_v52  ;;  %v692_v38 = vunpack.c.l.bf16 %v767_v26  ;;  %v196_v45 = vadd.f32 %v195_v19, %v194_v40 }
  0x2f   :  { %v275_v17 = vsel %vm25_vm0, %v1425_v31, 0.0  ;;  %v274_v51 = vadd.f32 %v273_v27, %v272_v47  ;;  %v287_v58 = vadd.f32 %v286_v57, %v285_v12  ;;  %v693_v62 = vunpack.c.h.bf16 %v767_v26 }
  0x30   :  { %v288_v32 = vsel %vm25_vm0, %v1426_v33, 0.0  ;;  %v176_v54 = vrot.slane %v175_v18, 1  ;;  %v257_v39 = vadd.f32 %v256_v23, %v255_v61  ;;  %v1427_v46 = vunpack.c.l.bf16 %v1134_v6 }
  0x31   :  { %v237_v49 = vrot.slane %v236_v37, 2  ;;  %v276_v55 = vadd.f32 %v275_v17, %v274_v51  ;;  %v289_v52 = vadd.f32 %v288_v32, %v287_v58  ;;  %v304_v41 = vsel %vm25_vm0, %v684_v24, 0.0 }
  0x32   :  { %v290_v30 = vsel %vm25_vm0, %v1427_v46, 0.0  ;;  %v217_v10 = vadd.f32 %v216_v28, %v215_v22  ;;  %v292_v48 = vsel %vm25_vm0, %v677_v0, 0.0  ;;  %v305_v40 = vsel %vm25_vm0, %v685_v60, 0.0 }
  0x33   :  { %v307_v56 = vsel %vm25_vm0, %v688_v14, 0.0  ;;  %v197_v29 = vrot.slane %v196_v45, 1  ;;  %v277_v43 = vrot.slane %v276_v55, 4  ;;  %v291_v44 = vadd.f32 %v290_v30, %v289_v52 }
  0x34   :  { %v306_v35 = vadd.f32 %v305_v40, %v304_v41  ;;  %v696_v13 = vunpack.c.l.bf16 %v768_v2  ;;  %v258_v63 = vrot.slane %v257_v39, 2  ;;  %v294_v4 = vsel %vm25_vm0, %v680_v9, 0.0  ;;  %v776_v40 = vld [vmem:[%s1397_s3 + $0x38] sm:$0xff]   ;;  %s879_s3 = scalar_lea.vmem %s560_s28, 128 }
  0x35   :  { %v309_v24 = vsel %vm25_vm0, %v689_v50, 0.0  ;;  %v238_v1 = vadd.f32 %v237_v49, %v236_v37  ;;  %v278_v6 = vadd.f32 %v277_v43, %v276_v55  ;;  %v293_v8 = vadd.f32 %v292_v48, %v291_v44  ;;  %v27_v49 = vld [vmem:[#allocation2] sm:$0xff]  ;;  %874 = vmatpush3.bf16.msra.mxu1 %v776_v40  ;;  %p880_p0 = scmp.ne.s32.totalorder %s560_s28, %s879_s3  ;;  %p885_p2 = scmp.lt.s32.totalorder %s879_s3, %s879_s3 }
  0x36   :  { %v308_v0 = vadd.f32 %v307_v56, %v306_v35  ;;  %v177_v21 = vadd.f32 %v176_v54, %v175_v18  ;;  %v218_v60 = vrot.slane %v217_v10, 1  ;;  %v296_v14 = vsel %vm25_vm0, %v681_v3, 0.0  ;;  %v567_v56 = vld [vmem:[%s1396_s2] ss:$0 sm:$0xff] }
  0x37   :  { %v311_v22 = vsel %vm25_vm0, %v692_v38, 0.0  ;;  %v198_v5 = vadd.f32 %v197_v29, %v196_v45  ;;  %v279_v16 = vrot.slane %v278_v6, 2  ;;  %v295_v7 = vadd.f32 %v294_v4, %v293_v8  ;;  %v569_v35 = vld [vmem:[%s1398_s4] ss:$0 sm:$0xff]  ;;  %p886_p3 = por %p885_p2, %p884_p1 }
  0x38   :  { %v310_v15 = vadd.f32 %v309_v24, %v308_v0  ;;  %v697_v19 = vunpack.c.h.bf16 %v768_v2  ;;  %v259_v9 = vadd.f32 %v258_v63, %v257_v39  ;;  %v313_v20 = vsel %vm25_vm0, %v693_v62, 0.0 }
  0x39   :  { %vm333_vm1 = vcmask 1041409   ;;  %v239_v42 = vrot.slane %v238_v1, 1  ;;  %v297_v25 = vadd.f32 %v296_v14, %v295_v7  ;;  %v219_v53 = vadd.f32 %v218_v60, %v217_v10  ;;  %p887_p4 = pnand %p886_p3, %p880_p0 }
  0x3a   :  { %v312_v11 = vadd.f32 %v311_v22, %v310_v15  ;;  %v315_v50 = vsel %vm25_vm0, %v696_v13, 0.0  ;;  %vm335_vm2 = vcmask 1042434   ;;  %v280_v59 = vadd.f32 %v279_v16, %v278_v6 }
  0x3b   :  { %v298_v3 = vrot.slane %v297_v25, 4  ;;  %v334_v18 = vsel %vm333_vm1, %v198_v5, %v177_v21  ;;  %vm905_vm3 = vmmov 0   ;;  %v1428_v61 = vmov 0.0  }
  0x3c   :  { %v314_v26 = vadd.f32 %v313_v20, %v312_v11  ;;  %807 = vmatprep.mubr.msk.f32.mxu0 %vm905_vm3, %v1428_v61  ;;  %842 = vmatprep.mubr.msk.f32.mxu1 %vm905_vm3, %v1428_v61  ;;  %v260_v36 = vrot.slane %v259_v9, 1  ;;  %v317_v27 = vsel %vm25_vm0, %v697_v19, 0.0  ;;  %v240_v37 = vadd.f32 %v239_v42, %v238_v1 }
  0x3d   :  { %v299_v47 = vadd.f32 %v298_v3, %v297_v25  ;;  %v336_v34 = vsel %vm335_vm2, %v219_v53, %v334_v18  ;;  %vm337_vm4 = vcmask 1043459   ;;  %v281_v57 = vrot.slane %v280_v59, 1 }
  0x3e   :  { %v316_v12 = vadd.f32 %v315_v50, %v314_v26  ;;  %v261_v31 = vadd.f32 %v260_v36, %v259_v9  ;;  %v338_v32 = vsel %vm337_vm4, %v240_v37, %v336_v34  ;;  %vm339_vm5 = vcmask 1044484  }
  0x3f   :  { %v300_v28 = vrot.slane %v299_v47, 2  ;;  %v282_v38 = vadd.f32 %v281_v57, %v280_v59  ;;  %vm341_vm6 = vcmask 1045509   ;;  %vm343_vm7 = vcmask 1046534  }
  0x40   :  { %v318_v23 = vadd.f32 %v317_v27, %v316_v12  ;;  %v340_v58 = vsel %vm339_vm5, %v261_v31, %v338_v32  ;;  %vm345_vm8 = vcmask 1047559  }
  0x41   :  { %v301_v17 = vadd.f32 %v300_v28, %v299_v47  ;;  %v342_v46 = vsel %vm341_vm6, %v282_v38, %v340_v58 }
  0x42   :  { %v319_v33 = vrot.slane %v318_v23, 4 }
  0x43   :  { %v302_v45 = vrot.slane %v301_v17, 1 }
  0x44   :  { %v320_v51 = vadd.f32 %v319_v33, %v318_v23 }
  0x45   :  { %v303_v54 = vadd.f32 %v302_v45, %v301_v17 }
  0x46   :  { %v321_v62 = vrot.slane %v320_v51, 2 }
  0x47   :  { %v344_v2 = vsel %vm343_vm7, %v303_v54, %v342_v46 }
  0x48   :  { %v322_v39 = vadd.f32 %v321_v62, %v320_v51 }
  0x4a   :  { %v323_v30 = vrot.slane %v322_v39, 1 }
  0x4c   :  { %v324_v55 = vadd.f32 %v323_v30, %v322_v39 }
  0x4e   :  { %v346_v52 = vsel %vm345_vm8, %v324_v55, %v344_v2 }
  0x4f   :  { %v348_v41 = vadd.f32 %v346_v52, %v27_v49 }
  0x51   :  { %349 = vst.msk [vmem:[#allocation2] sm:$0xff] %vm25_vm0, %v348_v41 }
  0x58   :  { %v353_v10 = vld [vmem:[#allocation2] sm:$0xff] }
  0x59   :  { %v354_v48 = vmul.f32 0.015625, %v353_v10 }
  0x5b   :  { %808 = vmatmul.mubr.msk.f32.vlgmr.msra.gmra.mrb[0].mxu0 %vm25_vm0, %v354_v48 }
 0x12e   :  { %v471_v29 = vpop.f32.mrb[0].mxu0 }
 0x12f   :  { %v472_v43 = vadd.f32 %v567_v56, %v471_v29  ;;  %v809_v44 = vpop.f32.mrb[1].mxu0 }
 0x131   :  { %843 = vmatmul.mubr.f32.vlgmr.msra.gmra.mrb[0].mxu1 %v472_v43 }
 0x204   :  { %v548_v13 = vpop.f32.mrb[0].mxu1 }
 0x205   :  { %v549_v63 = vadd.f32 %v569_v35, %v548_v13  ;;  %v844_v4 = vpop.f32.mrb[1].mxu1 }
 0x207   :  { %552 = vst.msk [vmem:[#allocation3] sm:$0xff] %vm25_vm0, %v549_v63 }
 0x208   :  { %890 = shalt.err (!%p887_p4)
}
 0x209   :  { %s891_s30 = scalar_lea.hbm %s1399_s5, 128 }
 0x20a   :  { %p892_p5 = scmp.ne.s32.totalorder %s1399_s5, %s891_s30  ;;  %p895_p6 = scmp.lt.u32.totalorder %s891_s30, %s1399_s5 }
 0x20c   :  { %p897_p7 = pnand %p895_p6, %p892_p5 }
 0x20e   :  { %900 = shalt.err (!%p897_p7)
}
 0x20f   :  { %562 = dma.vmem_to_hbm [thread:$0]  %s560_s28, 128, %s1399_s5, [#allocation4]  }
 0x210   :  { %901 = dma.done.wait [#allocation4], 128  }
 0x211   :  { %902 = vsyncadd [#allocation4], 4294967168 }
 0x212   :  { %566 = vsyncpa [#allocation4], 1 }

</bundles_post_ra>
